<compile_context>
chip_gen: v6e
topology: v6e:2x2x1
jax: 0.10.0
libtpu: 0.0.40
codegen_flags: <defaults>
</compile_context>

<pallas_src>
import jax
import jax.numpy as jnp
from jax import lax
from jax.experimental import pallas as pl
from jax.experimental.pallas import tpu as pltpu


# ---------------------------------------------------------------------------
# Path A: small hidden size — XLA gather + single Pallas matvec.
# ---------------------------------------------------------------------------
def _head_kernel(x_ref, w_ref, bias_ref, out_ref):
    # (1, H) x (B_pad, H) contracting on H -> lane-dense (1, B_pad).
    rewards = lax.dot_general(
        w_ref[...], x_ref[...], (((1,), (1,)), ((), ())),
        preferred_element_type=jnp.float32,
    ) + bias_ref[0, 0]
    out_ref[...] = rewards.astype(out_ref.dtype)


# ---------------------------------------------------------------------------
# Path B: production hidden size — manual DMA row gather, double-buffered.
# ---------------------------------------------------------------------------
def _make_gather_reward_kernel(TB, H):
    def kernel(flat_idx_ref,   # SMEM (B_pad,) i32: flat row index of last token
               hid_hbm,        # ANY  (B*S, H): last hidden states, raw HBM
               w_ref,          # VMEM (1, H): reward head weight, lane-dense
               bias_ref,       # SMEM (1, 1): reward head bias
               out_ref,        # VMEM (1, TB): rewards for this batch tile
               rows,           # VMEM (2, TB, H): double-buffered gathered rows
               sem):           # DMA sem, one slot per buffer
        g = pl.program_id(0)
        n = pl.num_programs(0)

        def issue_tile(tile, slot):
            base = tile * TB
            # Fully unrolled: TB is compile-time, so the LLO scheduler can
            # pack the TB descriptor pushes back-to-back.
            for t in range(TB):
                r = flat_idx_ref[base + t]
                pltpu.make_async_copy(
                    hid_hbm.at[pl.ds(r, 1), :],
                    rows.at[slot, pl.ds(t, 1), :],
                    sem.at[slot],
                ).start()

        def wait_tile(slot):
            # Single batched wait: the DMA semaphore counts bytes, so one
            # (TB, H)-sized dummy descriptor drains all TB row copies of this
            # slot. src == dst == the slot buffer keeps the dummy in bounds.
            pltpu.make_async_copy(
                rows.at[slot], rows.at[slot], sem.at[slot]
            ).wait()

        # Prime: tile 0's gather into slot 0 on the first grid step.
        @pl.when(g == 0)
        def _():
            issue_tile(0, 0)

        slot = g % 2

        # Prefetch the next tile into the other slot before draining this one.
        @pl.when(g + 1 < n)
        def _():
            issue_tile(g + 1, 1 - slot)

        wait_tile(slot)

        # Native-dtype rows straight to the MXU (f32 accumulation); no VPU
        # upcast pass, half the VMEM/vreg pressure for bf16 inputs.
        gathered = rows[slot]                       # (TB, H)
        rewards = lax.dot_general(
            w_ref[...], gathered, (((1,), (1,)), ((), ())),
            preferred_element_type=jnp.float32,
        ) + bias_ref[0, 0]
        out_ref[...] = rewards.astype(out_ref.dtype)

    return kernel


# ---------------------------------------------------------------------------
# Wrapper.
# ---------------------------------------------------------------------------
def bradley_terry_rewards(hidden_states, attention_mask, w, b,
                          small_row_bytes=2048):
    """Per-example rewards.

    hidden_states:  (B, S, H)  last-layer hidden states of the base LM
    attention_mask: (B, S)     int mask (1 = real token, 0 = pad)
    w:              (H, 1)     reward head weight (nn.Linear(H, 1).weight.T)
    b:              ()         reward head bias
    returns:        (B,)       f32 rewards
    """
    B, S, H = hidden_states.shape
    hdtype = hidden_states.dtype

    # Last real token per row. mod S reproduces PyTorch's negative indexing
    # (an all-padding row gives index -1 -> last position) and keeps every
    # gather index in bounds.
    seq_lengths = jnp.sum(attention_mask.astype(jnp.int32), axis=1) - 1
    seq_idx = jnp.mod(seq_lengths, S).astype(jnp.int32)

    w_row = jnp.asarray(w).reshape(1, H).astype(hdtype)   # lane-dense weight
    bias_smem = jnp.asarray(b, jnp.float32).reshape(1, 1)

    row_bytes = H * jnp.dtype(hdtype).itemsize

    # ---- Path A: small hidden rows — per-row DMAs would be pure descriptor
    # overhead, so gather in XLA and run one pipelined matvec kernel. ----
    if row_bytes < small_row_bytes:
        B_pad = max(8, -(-B // 8) * 8)
        last_hidden = jnp.take_along_axis(
            hidden_states, seq_idx[:, None, None], axis=1)[:, 0, :]   # (B, H)
        last_pad = jnp.zeros((B_pad, H), hdtype).at[:B].set(last_hidden)

        out = pl.pallas_call(
            _head_kernel,
            out_shape=jax.ShapeDtypeStruct((1, B_pad), jnp.float32),
            grid_spec=pltpu.PrefetchScalarGridSpec(
                num_scalar_prefetch=0,
                grid=(1,),
                in_specs=[
                    pl.BlockSpec((B_pad, H), lambda i: (0, 0)),   # gathered rows
                    pl.BlockSpec((1, H), lambda i: (0, 0)),       # weight
                    pl.BlockSpec(memory_space=pltpu.SMEM),        # bias
                ],
                out_specs=pl.BlockSpec((1, B_pad), lambda i: (0, 0)),
            ),
        )(last_pad, w_row, bias_smem)
        return out[0, :B]

    # ---- Path B: production hidden size — manual-DMA row gather. ----
    # TB either covers the whole (8-rounded) batch in one tile, or is 128 so
    # the (1, TB) output block stays a legal lane-dense block of (1, B_pad).
    B_ceil8 = max(8, -(-B // 8) * 8)
    if B_ceil8 <= 256:
        TB = B_ceil8
        num_tiles = 1
    else:
        TB = 128
        num_tiles = -(-B // TB)
    B_pad = num_tiles * TB

    flat_idx = (jnp.arange(B, dtype=jnp.int32) * S + seq_idx).astype(jnp.int32)
    # Padding slots gather row 0; their results are discarded below.
    flat_idx_pad = jnp.zeros((B_pad,), jnp.int32).at[:B].set(flat_idx)

    hid_flat = hidden_states.reshape(B * S, H)   # free, layout-preserving

    out = pl.pallas_call(
        _make_gather_reward_kernel(TB, H),
        out_shape=jax.ShapeDtypeStruct((1, B_pad), jnp.float32),
        grid_spec=pltpu.PrefetchScalarGridSpec(
            num_scalar_prefetch=1,
            grid=(num_tiles,),
            in_specs=[
                pl.BlockSpec(memory_space=pl.ANY),              # hidden states (HBM)
                pl.BlockSpec((1, H), lambda g, idx: (0, 0)),    # weight (revisited)
                pl.BlockSpec(memory_space=pltpu.SMEM),          # bias
            ],
            out_specs=pl.BlockSpec((1, TB), lambda g, idx: (0, g)),
            scratch_shapes=[
                pltpu.VMEM((2, TB, H), hdtype),                 # double-buffered rows
                pltpu.SemaphoreType.DMA((2,)),                  # one sem per slot
            ],
        ),
        compiler_params=pltpu.CompilerParams(
            # Sequential: the cross-tile prefetch handoff requires in-order
            # grid execution (a "parallel" split would skip the prime).
            dimension_semantics=("arbitrary",),
        ),
    )(flat_idx_pad, hid_flat, w_row, bias_smem)
    return out[0, :B]


# ---------------------------------------------------------------------------
# Test.
# ---------------------------------------------------------------------------
def _reference(hidden_states, attention_mask, w, b):
    B = hidden_states.shape[0]
    seq_lengths = attention_mask.sum(axis=1) - 1
    last_hidden = hidden_states[jnp.arange(B), seq_lengths]   # (B, H)
    return (last_hidden @ w)[:, 0] + b


if __name__ == "__main__":
    key = jax.random.PRNGKey(0)

    # ---- Small-shape check (exercises the small-H fast path). ----
    B, S, H = 2, 8, 32
    k_hid, k_w, k_b, k_hid2, k_len2 = jax.random.split(key, 5)

    # Synthetic "last hidden states" from the (untranslated) base LM.
    hidden_states = jax.random.normal(k_hid, (B, S, H), dtype=jnp.float32)
    lengths = jnp.array([S, 5], dtype=jnp.int32)
    attention_mask = (
        lax.broadcasted_iota(jnp.int32, (B, S), 1) < lengths[:, None]
    ).astype(jnp.int32)

    w = jax.random.normal(k_w, (H, 1), dtype=jnp.float32) * 0.02
    b = jax.random.normal(k_b, (), dtype=jnp.float32) * 0.02

    rewards = bradley_terry_rewards(hidden_states, attention_mask, w, b)
    rewards = jax.block_until_ready(rewards)
    ref = _reference(hidden_states, attention_mask, w, b)
    assert jnp.allclose(rewards, ref, atol=1e-5, rtol=1e-5), (rewards, ref)

    # ---- Moderate-shape check (exercises the manual-DMA gather kernel with
    # multiple tiles and cross-tile double buffering). ----
    B2, S2, H2 = 272, 8, 512
    hid2 = jax.random.normal(k_hid2, (B2, S2, H2), dtype=jnp.float32)
    len2 = jax.random.randint(k_len2, (B2,), 1, S2 + 1)
    mask2 = (
        lax.broadcasted_iota(jnp.int32, (B2, S2), 1) < len2[:, None]
    ).astype(jnp.int32)
    w2 = jax.random.normal(k_w, (H2, 1), dtype=jnp.float32) * 0.02
    b2 = jax.random.normal(k_b, (), dtype=jnp.float32) * 0.02

    rewards2 = bradley_terry_rewards(hid2, mask2, w2, b2)
    rewards2 = jax.block_until_ready(rewards2)
    ref2 = _reference(hid2, mask2, w2, b2)
    assert jnp.allclose(rewards2, ref2, atol=1e-4, rtol=1e-4), (rewards2, ref2)

    print("KERNEL_OK")
</pallas_src>

<mosaic_0001>
module attributes {stable_mosaic.version = 11 : i64} {
  func.func @_head_kernel(%arg0: i32, %arg1: memref<8x32xf32, #tpu.memory_space<vmem>>, %arg2: memref<1x32xf32, #tpu.memory_space<vmem>>, %arg3: memref<1x1xf32, #tpu.memory_space<smem>>, %arg4: memref<1x8xf32, #tpu.memory_space<vmem>>) attributes {dimension_semantics = [#tpu.dimension_semantics<arbitrary>], iteration_bounds = array<i64: 1>, scalar_prefetch = 0 : i64, scratch_operands = 0 : i64, tpu.core_type = #tpu.core_type<tc>, window_params = [{pipeline_mode = #tpu.pipeline_mode<synchronous>, transform_indices = @transform_0, window_bounds = array<i64: 8, 32>}, {pipeline_mode = #tpu.pipeline_mode<synchronous>, transform_indices = @transform_1, window_bounds = array<i64: 1, 32>}, {transform_indices = @transform_2, window_bounds = array<i64: 1, 1>}, {pipeline_mode = #tpu.pipeline_mode<synchronous>, transform_indices = @transform_3, window_bounds = array<i64: 1, 8>}]} {
    %c0 = arith.constant 0 : index
    %c0_0 = arith.constant 0 : index
    %0 = vector.load %arg2[%c0, %c0_0] : memref<1x32xf32, #tpu.memory_space<vmem>>, vector<1x32xf32>
    %c0_1 = arith.constant 0 : index
    %c0_2 = arith.constant 0 : index
    %1 = vector.load %arg1[%c0_1, %c0_2] : memref<8x32xf32, #tpu.memory_space<vmem>>, vector<8x32xf32>
    %cst = arith.constant dense<0.000000e+00> : vector<1x8xf32>
    %2 = tpu.matmul %0, %1, %cst {dimension_numbers = #tpu.dot_dimension_numbers<[1], [1], [0], [0], [0, 0, 1, 0], [], []>} : vector<1x32xf32>, vector<8x32xf32>, vector<1x8xf32> -> vector<1x8xf32>
    %c0_3 = arith.constant 0 : index
    %c0_4 = arith.constant 0 : index
    %3 = memref.load %arg3[%c0_3, %c0_4] : memref<1x1xf32, #tpu.memory_space<smem>>
    %4 = vector.broadcast %3 : f32 to vector<1x8xf32>
    %5 = arith.addf %2, %4 : vector<1x8xf32>
    %c0_5 = arith.constant 0 : index
    %c0_6 = arith.constant 0 : index
    %6 = vector.load %arg4[%c0_5, %c0_6] : memref<1x8xf32, #tpu.memory_space<vmem>>, vector<1x8xf32>
    tpu.vector_store %arg4[%c0_5, %c0_6], %5 {strides = array<i32>} : memref<1x8xf32, #tpu.memory_space<vmem>>, vector<1x8xf32>,
    return
  }
  func.func @transform_0(%arg0: i32) -> (i32, i32) {
    %c0_i32 = arith.constant 0 : i32
    %c0_i32_0 = arith.constant 0 : i32
    %c0_i32_1 = arith.constant 0 : i32
    return %c0_i32, %c0_i32_0 : i32, i32
  }
  func.func @transform_1(%arg0: i32) -> (i32, i32) {
    %c0_i32 = arith.constant 0 : i32
    %c0_i32_0 = arith.constant 0 : i32
    %c0_i32_1 = arith.constant 0 : i32
    return %c0_i32, %c0_i32_0 : i32, i32
  }
  func.func @transform_2(%arg0: i32) -> (i32, i32) {
    %c0_i32 = arith.constant 0 : i32
    %c0_i32_0 = arith.constant 0 : i32
    %c0_i32_1 = arith.constant 0 : i32
    return %c0_i32, %c0_i32_0 : i32, i32
  }
  func.func @transform_3(%arg0: i32) -> (i32, i32) {
    %c0_i32 = arith.constant 0 : i32
    %c0_i32_0 = arith.constant 0 : i32
    %c0_i32_1 = arith.constant 0 : i32
    return %c0_i32, %c0_i32_0 : i32, i32
  }
}

</mosaic_0001>

<bundles_post_ra>
// kernel: tpu_custom_call.1
= control target key start
LH: loop header
LB: loop body
LE: loop exit
PB: predicated region body
PF: predicated region fallthrough
CT: control target
= control target key end

     0   :  { %9 = vsyncpa [#allocation4], 0  ;;  %s219_s0 = inlined_call_operand.hbm [shape: f32[8,32], index: 0, kind: input, shape index: {}]   ;;  %s220_s1 = inlined_call_operand.vmem [shape: f32[1,32], index: 1, kind: input, shape index: {}]   ;;  %s221_s2 = inlined_call_operand.<no memory space> [shape: f32[1,1], index: 2, kind: input, shape index: {}]   ;;  %s222_s3 = inlined_call_operand.hbm [shape: f32[1,8], index: 3, kind: output, shape index: {}]  }
   0x1   :  { %10 = vsyncpa [#allocation5], 0  ;;  %s183_s12 = smov [#allocation3]  }
   0x2   :  { %s17_s13 = sshll.u32 %s183_s12, 4  ;;  %s18_s13 = int_to_ptr.vmem [resolvable:$true] %s17_s13 }
   0x3   :  { %s147_s14 = scalar_lea.vmem %s18_s13, 128  ;;  %p152_p1 = scmp.lt.s32.totalorder %s18_s13, %s18_s13 }
   0x4   :  { %p148_p0 = scmp.ne.s32.totalorder %s18_s13, %s147_s14  ;;  %p153_p2 = scmp.lt.s32.totalorder %s147_s14, %s147_s14 }
   0x6   :  { %p154_p3 = por %p153_p2, %p152_p1 }
   0x8   :  { %p155_p4 = pnand %p154_p3, %p148_p0 }
   0xa   :  { %158 = shalt.err (!%p155_p4)
}
   0xb   :  { %20 = dma.hbm_to_vmem [thread:$0]  %s219_s0, 128, %s18_s13, [#allocation4]  }
   0xc   :  { %179 = dma.done.wait [#allocation4], 128  }
   0xd   :  { %180 = vsyncadd [#allocation4], 4294967168  ;;  %v184_v0 = vmov 0.0   ;;  %vm185_vm0 = vmmov 0   ;;  %vm32_vm1 = vcmask 261120   ;;  %v29_v1 = vld [vmem:[#allocation3] sm:$0xff]  ;;  %v31_v3 = vstv %s221_s2 }
   0xe   :  { %130 = vmatprep.subr.mxu0 %v184_v0  ;;  %132 = vmatprep.mubr.msk.f32.mxu0 %vm185_vm0, %v184_v0  ;;  %v28_v2 = vld [vmem:[%s220_s1] sm:$0x1]  ;;  %s186_s21 = smov [#allocation6]   ;;  %vm109_vm2 = vcmask 57344  }
   0xf   :  { %131 = vmatpush3.xpose.msk.msra.mxu0 %vm32_vm1, %v29_v1  ;;  %s117_s0 = sshll.u32 %s186_s21, 4  ;;  %s118_s0 = int_to_ptr.vmem [resolvable:$true] %s117_s0 }
  0x10   :  { %s159_s22 = scalar_lea.vmem %s118_s0, 16  ;;  %s163_s23 = scalar_lea.vmem %s118_s0, 32 }
  0x11   :  { %p160_p5 = scmp.ne.s32.totalorder %s118_s0, %s159_s22  ;;  %p164_p6 = scmp.lt.s32.totalorder %s118_s0, %s118_s0 }
  0x12   :  { %133 = vmatmul.mubr.msk.f32.vlgmr.msra.gmra.mxu0 %vm32_vm1, %v28_v2  ;;  %p165_p7 = scmp.lt.s32.totalorder %s163_s23, %s159_s22 }
  0x14   :  { %p166_p8 = por %p165_p7, %p164_p6 }
  0x16   :  { %p167_p9 = pnand %p166_p8, %p160_p5 }
  0xd2   :  { %v105_v4 = vpop.f32.mrf.mxu0 }
  0xd3   :  { %v106_v5 = vadd.f32 %v105_v4, %v31_v3 }
  0xd4   :  { %v134_v6 = vpop.f32.mrf.mxu0 }
  0xd5   :  { %110 = vst.msk [vmem:[#allocation6] sm:$0x1] %vm109_vm2, %v106_v5 }
  0xd6   :  { %170 = shalt.err (!%p167_p9)
}
  0xd7   :  { %120 = dma.vmem_to_hbm [thread:$0]  %s118_s0, 16, %s222_s3, [#allocation5]  }
  0xd8   :  { %181 = dma.done.wait [#allocation5], 16  }
  0xd9   :  { %182 = vsyncadd [#allocation5], 4294967280 }
  0xda   :  { %124 = vsyncpa [#allocation4], 1 }
  0xdb   :  { %125 = vsyncpa [#allocation5], 1 }

</bundles_post_ra>
